<compile_context>
chip_gen: v6e
topology: v6e:2x2x1
jax: 0.10.0
libtpu: 0.0.40
codegen_flags: <defaults>
</compile_context>

<pallas_src>
import functools

import jax
import jax.numpy as jnp
from jax.experimental import pallas as pl
from jax.experimental.pallas import tpu as pltpu


def _rmsnorm_kernel(x_ref, w_ref, o_ref, *, eps: float, inv_h: float):
    # x_ref: (tile_rows, H), w_ref: (1, H) f32, o_ref: (tile_rows, H)
    x = x_ref[...].astype(jnp.float32)
    # Sum of squares over the normalized (last) axis; fold 1/H into the rsqrt
    # argument instead of a separate mean/divide.
    ss = jnp.sum(x * x, axis=-1, keepdims=True)
    inv_rms = jax.lax.rsqrt(ss * inv_h + eps)            # EUP rsqrt (free slot)
    o_ref[...] = (x * inv_rms * w_ref[...]).astype(o_ref.dtype)


def _choose_tile_rows(rows: int, hidden: int, itemsize: int) -> int:
    """Pick a sublane-aligned row tile sized for VMEM, not grid overhead."""
    # Sublane packing: 8 rows/vreg for 32-bit, 16 for bf16, 32 for int8/fp8.
    sublane = 8 * max(1, 4 // max(itemsize, 1))
    # VMEM budget for the double-buffered input + output row tiles. 32 MiB
    # stays well inside v7x's 64 MiB physical VMEM and needs only a modest
    # vmem_limit_bytes bump on v5e/v6e, while being big enough to amortize the
    # ~0.35 us per-grid-step overhead.
    budget_bytes = 32 * 1024 * 1024
    bytes_per_row = 2 * 2 * hidden * itemsize            # (in + out) x double-buffer
    max_rows = max(sublane, budget_bytes // max(bytes_per_row, 1))
    tile_rows = max(sublane, (max_rows // sublane) * sublane)
    tile_rows = min(tile_rows, 1024)                     # gains flatten past ~512-1024 rows
    # Never exceed the (sublane-rounded) total row count.
    rows_rounded = ((rows + sublane - 1) // sublane) * sublane
    tile_rows = min(tile_rows, rows_rounded)
    # Keep >= ~4 grid steps when the input is large enough, so the single
    # ("parallel",) grid axis still shards across both v7x TensorCores.
    min_steps = 4
    if rows_rounded >= min_steps * sublane and tile_rows > rows_rounded // min_steps:
        tile_rows = max(sublane, ((rows_rounded // min_steps) // sublane) * sublane)
    return tile_rows


def rms_norm(x: jax.Array, weight: jax.Array, eps=None, *, tile_rows: int | None = None):
    """RMSNorm over the trailing dims of x that match weight.shape. Matches
    torch.nn.RMSNorm / F.rms_norm with elementwise_affine weight.

    Note: with eps=None the torch default torch.finfo(x.dtype).eps is used;
    for bf16 inputs that is ~7.8e-3 applied to the f32 mean of squares, which
    matches torch semantics but is larger than the 1e-5/1e-6 many models use.
    """
    if eps is None:
        eps = float(jnp.finfo(x.dtype).eps)

    orig_shape = x.shape
    ndims_norm = max(weight.ndim, 1)
    norm_shape = orig_shape[-ndims_norm:]
    assert tuple(weight.shape) == tuple(norm_shape), (weight.shape, norm_shape)

    hidden = 1
    for d in norm_shape:
        hidden *= int(d)
    # NOTE: for peak store bandwidth, hidden should be a multiple of 128
    # (lane-dense stores). Pad the model's hidden dim once, not per call.

    x2d = x.reshape(-1, hidden)
    rows = x2d.shape[0]
    itemsize = jnp.dtype(x.dtype).itemsize

    if tile_rows is None:
        tile_rows = _choose_tile_rows(rows, hidden, itemsize)

    # Pre-cast the weight to f32 once here instead of per grid step; its block
    # index is constant so it is DMA'd to VMEM once and stays resident.
    w2d = weight.astype(jnp.float32).reshape(1, hidden)

    grid = (pl.cdiv(rows, tile_rows),)

    kernel = functools.partial(_rmsnorm_kernel, eps=float(eps), inv_h=1.0 / float(hidden))

    # Scoped-VMEM limit: actual need (double-buffered in/out tiles + weight)
    # plus headroom, capped well inside v7x's 64 MiB physical VMEM. (v5e's
    # default scoped limit is only 16 MiB, v6e's 32 MiB.)
    tile_bytes = tile_rows * hidden * itemsize
    vmem_need = 4 * tile_bytes + 2 * hidden * 4
    vmem_limit = int(min(max(vmem_need * 5 // 4 + (2 << 20), 16 << 20), 48 << 20))

    out = pl.pallas_call(
        kernel,
        out_shape=jax.ShapeDtypeStruct((rows, hidden), x.dtype),
        grid_spec=pltpu.PrefetchScalarGridSpec(
            num_scalar_prefetch=0,
            grid=grid,
            in_specs=[
                pl.BlockSpec((tile_rows, hidden), lambda i: (i, 0)),
                pl.BlockSpec((1, hidden), lambda i: (0, 0)),
            ],
            out_specs=pl.BlockSpec((tile_rows, hidden), lambda i: (i, 0)),
        ),
        compiler_params=pltpu.CompilerParams(
            dimension_semantics=("parallel",),
            vmem_limit_bytes=vmem_limit,
        ),
    )(x2d, w2d)

    return out.reshape(orig_shape)


def _reference(x, weight, eps):
    xf = x.astype(jnp.float32)
    ms = jnp.mean(xf * xf, axis=tuple(range(-max(weight.ndim, 1), 0)), keepdims=True)
    return (xf * jax.lax.rsqrt(ms + eps) * weight.astype(jnp.float32)).astype(x.dtype)


if __name__ == "__main__":
    key = jax.random.PRNGKey(0)

    # Small shapes consistent with the module's typical (batch, seq, hidden) use.
    batch, seq, hidden = 2, 8, 32
    x = jax.random.normal(key, (batch, seq, hidden), dtype=jnp.float32)
    # RMSNorm(hidden) with elementwise_affine=True -> weight initialized to ones.
    weight = jnp.ones((hidden,), dtype=jnp.float32)

    y = rms_norm(x, weight, eps=None)
    y = jax.block_until_ready(y)
    eps = float(jnp.finfo(x.dtype).eps)
    ref = _reference(x, weight, eps)
    assert y.shape == x.shape
    assert jnp.allclose(y, ref, atol=1e-5, rtol=1e-5)

    # Also exercise the no-pad partial-last-block path (rows not a multiple of
    # the row tile).
    x2 = jax.random.normal(jax.random.PRNGKey(1), (3, 5, hidden), dtype=jnp.float32)
    y2 = jax.block_until_ready(rms_norm(x2, weight, eps=None))
    ref2 = _reference(x2, weight, eps)
    assert jnp.allclose(y2, ref2, atol=1e-5, rtol=1e-5)

    # Explicit-eps path (common model configuration) and bf16 input.
    x3 = jax.random.normal(jax.random.PRNGKey(2), (batch, seq, hidden), dtype=jnp.bfloat16)
    w3 = (1.0 + 0.1 * jax.random.normal(jax.random.PRNGKey(3), (hidden,))).astype(jnp.bfloat16)
    y3 = jax.block_until_ready(rms_norm(x3, w3, eps=1e-6))
    ref3 = _reference(x3, w3, 1e-6)
    assert jnp.allclose(y3.astype(jnp.float32), ref3.astype(jnp.float32), atol=2e-2, rtol=2e-2)

    print("KERNEL_OK")
</pallas_src>

<mosaic_0001>
module attributes {stable_mosaic.version = 11 : i64} {
  func.func @_rmsnorm_kernel(%arg0: i32, %arg1: memref<16x32xf32, #tpu.memory_space<vmem>>, %arg2: memref<1x32xf32, #tpu.memory_space<vmem>>, %arg3: memref<16x32xf32, #tpu.memory_space<vmem>>) attributes {dimension_semantics = [#tpu.dimension_semantics<parallel>], iteration_bounds = array<i64: 1>, scalar_prefetch = 0 : i64, scratch_operands = 0 : i64, tpu.core_type = #tpu.core_type<tc>, window_params = [{transform_indices = @transform_0, window_bounds = array<i64: 16, 32>}, {pipeline_mode = #tpu.pipeline_mode<synchronous>, transform_indices = @transform_1, window_bounds = array<i64: 1, 32>}, {transform_indices = @transform_2, window_bounds = array<i64: 16, 32>}]} {
    %c0 = arith.constant 0 : index
    %c0_0 = arith.constant 0 : index
    %0 = vector.load %arg1[%c0, %c0_0] : memref<16x32xf32, #tpu.memory_space<vmem>>, vector<16x32xf32>
    %1 = arith.mulf %0, %0 : vector<16x32xf32>
    %cst = arith.constant dense<0.000000e+00> : vector<16xf32>
    %2 = vector.multi_reduction <add>, %1, %cst [1] : vector<16x32xf32> to vector<16xf32>
    %3 = vector.shape_cast %2 : vector<16xf32> to vector<16x1xf32>
    %cst_1 = arith.constant 3.125000e-02 : f32
    %4 = vector.broadcast %cst_1 : f32 to vector<16x1xf32>
    %5 = arith.mulf %3, %4 : vector<16x1xf32>
    %cst_2 = arith.constant 1.1920929E-7 : f32
    %6 = vector.broadcast %cst_2 : f32 to vector<16x1xf32>
    %7 = arith.addf %5, %6 : vector<16x1xf32>
    %8 = math.rsqrt %7 : vector<16x1xf32>
    %9 = vector.broadcast %8 : vector<16x1xf32> to vector<16x32xf32>
    %10 = arith.mulf %0, %9 : vector<16x32xf32>
    %c0_3 = arith.constant 0 : index
    %c0_4 = arith.constant 0 : index
    %11 = vector.load %arg2[%c0_3, %c0_4] : memref<1x32xf32, #tpu.memory_space<vmem>>, vector<1x32xf32>
    %12 = vector.broadcast %11 : vector<1x32xf32> to vector<16x32xf32>
    %13 = arith.mulf %10, %12 : vector<16x32xf32>
    %c0_5 = arith.constant 0 : index
    %c0_6 = arith.constant 0 : index
    %14 = vector.load %arg3[%c0_5, %c0_6] : memref<16x32xf32, #tpu.memory_space<vmem>>, vector<16x32xf32>
    tpu.vector_store %arg3[%c0_5, %c0_6], %13 {strides = array<i32>} : memref<16x32xf32, #tpu.memory_space<vmem>>, vector<16x32xf32>,
    return
  }
  func.func @transform_0(%arg0: i32) -> (i32, i32) {
    %c0_i32 = arith.constant 0 : i32
    %c0_i32_0 = arith.constant 0 : i32
    return %arg0, %c0_i32 : i32, i32
  }
  func.func @transform_1(%arg0: i32) -> (i32, i32) {
    %c0_i32 = arith.constant 0 : i32
    %c0_i32_0 = arith.constant 0 : i32
    %c0_i32_1 = arith.constant 0 : i32
    return %c0_i32, %c0_i32_0 : i32, i32
  }
  func.func @transform_2(%arg0: i32) -> (i32, i32) {
    %c0_i32 = arith.constant 0 : i32
    %c0_i32_0 = arith.constant 0 : i32
    return %arg0, %c0_i32 : i32, i32
  }
}

</mosaic_0001>

<bundles_post_ra>
// kernel: tpu_custom_call.1
= control target key start
LH: loop header
LB: loop body
LE: loop exit
PB: predicated region body
PF: predicated region fallthrough
CT: control target
= control target key end

     0   :  { %7 = vsyncpa [#allocation3], 0  ;;  %s164_s0 = inlined_call_operand.hbm [shape: f32[16,32], index: 0, kind: input, shape index: {}]   ;;  %s165_s1 = inlined_call_operand.vmem [shape: f32[1,32], index: 1, kind: input, shape index: {}]   ;;  %s166_s2 = inlined_call_operand.hbm [shape: f32[16,32], index: 2, kind: output, shape index: {}]  }
   0x1   :  { %8 = vsyncpa [#allocation4], 0  ;;  %s126_s9 = smov [#allocation2]  }
   0x2   :  { %s14_s10 = sshll.u32 %s126_s9, 4  ;;  %s15_s10 = int_to_ptr.vmem [resolvable:$true] %s14_s10 }
   0x3   :  { %s90_s11 = scalar_lea.vmem %s15_s10, 256  ;;  %p95_p1 = scmp.lt.s32.totalorder %s15_s10, %s15_s10 }
   0x4   :  { %p91_p0 = scmp.ne.s32.totalorder %s15_s10, %s90_s11  ;;  %p96_p2 = scmp.lt.s32.totalorder %s90_s11, %s90_s11 }
   0x6   :  { %p97_p3 = por %p96_p2, %p95_p1 }
   0x8   :  { %p98_p4 = pnand %p97_p3, %p91_p0 }
   0xa   :  { %101 = shalt.err (!%p98_p4)
}
   0xb   :  { %s127_s12 = smov 128   ;;  %s128_s13 = smov 8  }
   0xc   :  { %20 = dma.hbm_to_vmem [thread:$0]  %s164_s0, 256, %s15_s10, [#allocation3], %s127_s12, %s127_s12, %s128_s13  }
   0xd   :  { %122 = dma.done.wait [#allocation3], 256  }
   0xe   :  { %123 = vsyncadd [#allocation3], 4294967040  ;;  %v26_v0 = vld [vmem:[#allocation2] sm:$0xff]  ;;  %vm30_vm0 = vcmask 261120   ;;  %v27_v1 = vld [vmem:[#allocation2 + $0x8] sm:$0xff]  ;;  %s129_s17 = smov [#allocation5]  }
   0xf   :  { %v28_v2 = vmul.f32 %v26_v0, %v26_v0  ;;  %v29_v3 = vmul.f32 %v27_v1, %v27_v1  ;;  %v73_v13 = vld [vmem:[%s165_s1] ss:$0 sm:$0xff]  ;;  %s61_s18 = sshll.u32 %s129_s17, 4  ;;  %s62_s18 = int_to_ptr.vmem [resolvable:$true] %s61_s18 }
  0x10   :  { %s102_s19 = scalar_lea.vmem %s62_s18, 256  ;;  %p107_p6 = scmp.lt.s32.totalorder %s62_s18, %s62_s18 }
  0x11   :  { %v31_v4 = vsel %vm30_vm0, %v28_v2, 0.0  ;;  %v34_v5 = vsel %vm30_vm0, %v29_v3, 0.0  ;;  %p103_p5 = scmp.ne.s32.totalorder %s62_s18, %s102_s19  ;;  %p108_p7 = scmp.lt.s32.totalorder %s102_s19, %s102_s19 }
  0x12   :  { %32 = vadd.xlane.f32.xlu0 %v31_v4 }
  0x13   :  { %p109_p8 = por %p108_p7, %p107_p6 }
  0x15   :  { %p110_p9 = pnand %p109_p8, %p103_p5 }
  0x16   :  { %35 = vadd.xlane.f32.xlu0 %v34_v5 }
  0x9b   :  { %v33_v6 = vpop.xlane.xlu0 %32 }
  0x9c   :  { %v37_v7 = vmul.f32 0.03125, %v33_v6 }
  0x9e   :  { %v39_v8 = vadd.f32 1.1920929e-07, %v37_v7 }
  0x9f   :  { %v36_v9 = vpop.xlane.xlu0 %35 }
  0xa0   :  { %78 = vrsqrt.f32 %v39_v8  ;;  %v38_v10 = vmul.f32 0.03125, %v36_v9 }
  0xa2   :  { %v40_v11 = vadd.f32 1.1920929e-07, %v38_v10 }
  0xa4   :  { %80 = vrsqrt.f32 %v40_v11 }
  0xad   :  { %v79_v12 = vpop.eup %78 }
  0xae   :  { %v43_v14 = vmul.f32 %v79_v12, %v26_v0 }
  0xb0   :  { %v52_v15 = vmul.f32 %v73_v13, %v43_v14 }
  0xb1   :  { %v81_v16 = vpop.eup %80 }
  0xb2   :  { %v44_v17 = vmul.f32 %v81_v16, %v27_v1  ;;  %54 = vst.msk [vmem:[#allocation5] sm:$0xff] %vm30_vm0, %v52_v15 }
  0xb4   :  { %v53_v18 = vmul.f32 %v73_v13, %v44_v17 }
  0xb6   :  { %55 = vst.msk [vmem:[#allocation5 + $0x8] sm:$0xff] %vm30_vm0, %v53_v18 }
  0xb7   :  { %113 = shalt.err (!%p110_p9)
}
  0xb8   :  { %67 = dma.vmem_to_hbm [thread:$0]  %s62_s18, 256, %s166_s2, [#allocation4], %s127_s12, %s127_s12, %s128_s13  }
  0xb9   :  { %124 = dma.done.wait [#allocation4], 256  }
  0xba   :  { %125 = vsyncadd [#allocation4], 4294967040 }
  0xbb   :  { %71 = vsyncpa [#allocation3], 1 }
  0xbc   :  { %72 = vsyncpa [#allocation4], 1 }

</bundles_post_ra>
